<compile_context>
chip_gen: v6e
topology: v6e:2x2x1
jax: 0.10.0
libtpu: 0.0.40
codegen_flags: <defaults>
</compile_context>

<pallas_src>
import functools

import jax
import jax.numpy as jnp
import numpy as np
from jax.experimental import pallas as pl
from jax.experimental.pallas import tpu as pltpu

LANE = 128
SUBLANE = 8


def _round_up(x, m):
    return (x + m - 1) // m * m


# ----------------------------- Pallas kernels -----------------------------

def _conv_kernel(wt_ref, p_ref, y_ref):
    """Final plain-conv layer: one M-tile of Y = W^T @ P^T.

    The bias is pre-folded into W^T (ones row in P^T), so this is a single
    bf16 MXU matmul with f32 accumulation and a full-width lane-dense store.
    """
    y_ref[...] = jnp.dot(wt_ref[...], p_ref[...],
                         preferred_element_type=jnp.float32)


def _conv_stats_kernel(wt_ref, p_ref, y_ref, sum_ref, ssq_ref, *, tm):
    """One M-tile of Y = W^T @ P^T plus lane-partial BatchNorm statistics.

    No bias: it cancels against the BN mean subtraction, and its absence keeps
    zero-padded M lanes exactly zero, so the batch statistics stay exact
    without masking.  Partial sums stay lane-resident (128 real partials per
    channel): every stored byte is useful and the reduction is cheap VPU adds
    (no cross-lane XLU reduce, no 128x broadcast write).
    """
    y = jnp.dot(wt_ref[...], p_ref[...], preferred_element_type=jnp.float32)
    y_ref[...] = y
    cout = y.shape[0]
    s = jnp.zeros((cout, LANE), jnp.float32)
    ss = jnp.zeros((cout, LANE), jnp.float32)
    for u in range(tm // LANE):                      # static, fully unrolled
        c = y[:, u * LANE:(u + 1) * LANE]
        s = s + c
        ss = ss + c * c
    sum_ref[...] = s[None, :, :]
    ssq_ref[...] = ss[None, :, :]


# ------------------------------- glue (JAX) --------------------------------

def _extract_patches_cm(x_cm, kh, kw, stride, pad):
    """Channel-major im2col emitting P^T = (kh*kw*C, N*OH*OW) directly.

    Row order is (kh, kw, c) with c fastest, matching W transposed to
    (O, KH, KW, I) and flattened.  No transposes anywhere.
    """
    C, N, H, W = x_cm.shape
    xp = jnp.pad(x_cm, ((0, 0), (0, 0), (pad, pad), (pad, pad)))
    OH = (H + 2 * pad - kh) // stride + 1
    OW = (W + 2 * pad - kw) // stride + 1
    rows = []
    for i in range(kh):
        for j in range(kw):
            rows.append(xp[:, :, i:i + stride * OH:stride,
                           j:j + stride * OW:stride])
    pt = jnp.concatenate(rows, axis=0).reshape(kh * kw * C, N * OH * OW)
    return pt, OH, OW


def _working_set_bytes(tm, kpad, cout_sub):
    """Double-buffered per-step VMEM footprint of the conv(+stats) kernel."""
    patch = 2 * kpad * tm                  # bf16 P^T tile
    ytile = 4 * cout_sub * tm              # f32 Y tile
    stats = 2 * 4 * cout_sub * LANE        # f32 partial sum / ssq tiles
    wres = 2 * cout_sub * kpad             # resident bf16 W^T
    return 2 * (patch + ytile + stats) + 2 * wres


def _pick_tm(m128, kpad, cout_sub, budget=24 << 20):
    """Largest M tile (multiple of 128, <= 4096) whose double-buffered working
    set fits the scoped-VMEM budget (leaves headroom under v7x's 32 MiB)."""
    tm = min(4096, m128)
    while tm > LANE and _working_set_bytes(tm, kpad, cout_sub) > budget:
        tm -= LANE
    return tm


def _vmem_limit(tm, kpad, cout_sub):
    need = _working_set_bytes(tm, kpad, cout_sub)
    return int(min(max(2 * need, 8 << 20), 32 << 20))


def conv_layer_pallas(x_cm, w_oihw, stride, pad, *, bias=None,
                      gamma=None, beta=None, eps=1e-5):
    """One encoder conv layer on channel-major activations.

    x_cm: (Cin, N, H, W) float32.
    BN path (gamma/beta given): returns (y_cm raw conv output, scale, shift)
      with scale/shift the exact training-mode BN affine coefficients; the
      caller applies act(y*scale+shift) in plain JAX (fuses with the next
      layer's patch construction).  Bias is dropped (cancels under BN).
    Plain path (bias given): returns y_cm with the bias folded into the matmul.
    y_cm: (Cout, N, OH, OW) float32.
    """
    Cin, N, H, W = x_cm.shape
    Cout, _, KH, KW = w_oihw.shape

    pt_raw, OH, OW = _extract_patches_cm(x_cm, KH, KW, stride, pad)
    M = N * OH * OW
    K = KH * KW * Cin

    fold_bias = bias is not None
    kpad = _round_up(K + (1 if fold_bias else 0), 16)   # bf16 sublane granule
    cout_sub = _round_up(Cout, SUBLANE)
    m128 = _round_up(M, LANE)
    tm = _pick_tm(m128, kpad, cout_sub)
    m_pad = _round_up(M, tm)
    grid_m = m_pad // tm

    # P^T (Kpad, M_pad) in bf16; optional ones row (row K) for the bias fold.
    pt = jnp.pad(pt_raw.astype(jnp.bfloat16),
                 ((0, kpad - K), (0, m_pad - M)))
    if fold_bias:
        pt = pt.at[K, :].set(1.0)

    # W^T (Cout_sub, Kpad) in bf16, same (kh, kw, cin) order; bias in column K.
    wm = jnp.transpose(w_oihw, (0, 2, 3, 1)).reshape(Cout, K).astype(jnp.float32)
    wt = jnp.zeros((cout_sub, kpad), jnp.float32).at[:Cout, :K].set(wm)
    if fold_bias:
        wt = wt.at[:Cout, K].set(bias.astype(jnp.float32))
    wt = wt.astype(jnp.bfloat16)

    weight_spec = pl.BlockSpec((cout_sub, kpad), lambda i: (0, 0))   # resident
    patch_spec = pl.BlockSpec((kpad, tm), lambda i: (0, i))          # M-tiled
    y_spec = pl.BlockSpec((cout_sub, tm), lambda i: (0, i))
    cparams = pltpu.CompilerParams(
        dimension_semantics=("parallel",),   # v7x: 2 TCs split the M grid
        vmem_limit_bytes=_vmem_limit(tm, kpad, cout_sub))

    if gamma is None:
        y = pl.pallas_call(
            _conv_kernel,
            out_shape=jax.ShapeDtypeStruct((cout_sub, m_pad), jnp.float32),
            grid=(grid_m,),
            in_specs=[weight_spec, patch_spec],
            out_specs=y_spec,
            compiler_params=cparams,
        )(wt, pt)
        return y[:Cout, :M].reshape(Cout, N, OH, OW)

    # --- conv + lane-partial batch statistics in one pass --------------------
    y, psum, pssq = pl.pallas_call(
        functools.partial(_conv_stats_kernel, tm=tm),
        out_shape=(jax.ShapeDtypeStruct((cout_sub, m_pad), jnp.float32),
                   jax.ShapeDtypeStruct((grid_m, cout_sub, LANE), jnp.float32),
                   jax.ShapeDtypeStruct((grid_m, cout_sub, LANE), jnp.float32)),
        grid=(grid_m,),
        in_specs=[weight_spec, patch_spec],
        out_specs=(y_spec,
                   pl.BlockSpec((1, cout_sub, LANE), lambda i: (i, 0, 0)),
                   pl.BlockSpec((1, cout_sub, LANE), lambda i: (i, 0, 0))),
        compiler_params=cparams,
    )(wt, pt)

    # Exact batch statistics (tiny f32 reduce over grid tiles and lanes).
    total = jnp.sum(psum, axis=(0, 2))
    totsq = jnp.sum(pssq, axis=(0, 2))
    mean = (total / M)[:Cout]
    var = (totsq / M)[:Cout] - mean * mean      # biased var (PyTorch training BN)
    scale = gamma.astype(jnp.float32) * jax.lax.rsqrt(var + eps)
    shift = beta.astype(jnp.float32) - mean * scale

    y_cm = y[:Cout, :M].reshape(Cout, N, OH, OW)
    return y_cm, scale, shift


_ACT = {
    'relu': lambda x: jnp.maximum(x, 0.0),
    'leaky': lambda x: jnp.where(x >= 0, x, 0.01 * x),
    'tanh': jnp.tanh,
    'gelu': lambda x: jax.nn.gelu(x, approximate=False),
    'silu': lambda x: x * jax.nn.sigmoid(x),
}


def init_encoder_params(config, key):
    """Deterministic params matching nn.Conv2d / nn.BatchNorm2d shapes & init."""
    params = []
    n_layers = config['convbn_blocks']
    ch, ks = config['convbn_channels'], config['conv_kernel_size']
    for i in range(n_layers):
        cin, cout, k = ch[i], ch[i + 1], ks[i]
        key, kw_, kb_ = jax.random.split(key, 3)
        bound = 1.0 / np.sqrt(cin * k * k)
        layer = {
            'w': jax.random.uniform(kw_, (cout, cin, k, k), jnp.float32, -bound, bound),
            'b': jax.random.uniform(kb_, (cout,), jnp.float32, -bound, bound),
        }
        if i < n_layers - 1:  # all but the final plain-conv layer carry BN + act
            layer['gamma'] = jnp.ones((cout,), jnp.float32)
            layer['beta'] = jnp.zeros((cout,), jnp.float32)
        params.append(layer)
    return params


def encoder_forward(params, x_nchw, config):
    act = _ACT[config['conv_activation_fn']]
    strides = config['conv_kernel_strides']
    # Channel-major (C, N, H, W) between layers: no per-layer transposes.
    x_cm = jnp.transpose(x_nchw, (1, 0, 2, 3)).astype(jnp.float32)
    for i, layer in enumerate(params):
        if 'gamma' in layer:
            y_cm, scale, shift = conv_layer_pallas(
                x_cm, layer['w'], strides[i], 1,
                gamma=layer['gamma'], beta=layer['beta'])
            # BN affine + activation in plain JAX (f32): XLA fuses this with
            # the next layer's patch construction, so raw Y is read only once.
            x_cm = act(y_cm * scale[:, None, None, None]
                       + shift[:, None, None, None])
        else:
            x_cm = conv_layer_pallas(x_cm, layer['w'], strides[i], 1,
                                     bias=layer['b'])
    return jnp.transpose(x_cm, (1, 0, 2, 3))   # back to NCHW once, at the end


def encoder_reference(params, x_nchw, config, eps=1e-5,
                      matmul_dtype=jnp.float32):
    """Pure-JAX reference of the PyTorch forward (training-mode BN).

    matmul_dtype=bfloat16 mirrors the kernel's bf16 matmul operands (with f32
    accumulation) for a tight check; float32 is the exact PyTorch semantics.
    """
    act = _ACT[config['conv_activation_fn']]
    strides = config['conv_kernel_strides']
    out = x_nchw.astype(jnp.float32)
    for i, layer in enumerate(params):
        out = jax.lax.conv_general_dilated(
            out.astype(matmul_dtype), layer['w'].astype(matmul_dtype),
            (strides[i], strides[i]), ((1, 1), (1, 1)),
            dimension_numbers=('NCHW', 'OIHW', 'NCHW'),
            preferred_element_type=jnp.float32)
        out = out + layer['b'][None, :, None, None]
        if 'gamma' in layer:
            mean = jnp.mean(out, axis=(0, 2, 3), keepdims=True)
            var = jnp.mean(jnp.square(out - mean), axis=(0, 2, 3), keepdims=True)
            out = (out - mean) * jax.lax.rsqrt(var + eps)
            out = (out * layer['gamma'][None, :, None, None]
                   + layer['beta'][None, :, None, None])
            out = act(out)
    return out


if __name__ == "__main__":
    config = {
        'latent_dim': 8,
        'convbn_blocks': 3,
        'convbn_channels': [4, 8, 8, 8],
        'conv_kernel_size': [3, 3, 3],
        'conv_kernel_strides': [2, 2, 1],
        'conv_activation_fn': 'silu',
    }
    key = jax.random.PRNGKey(0)
    key, kx = jax.random.split(key)
    x = jax.random.normal(kx, (2, 4, 16, 16), jnp.float32)   # NCHW, like PyTorch
    params = init_encoder_params(config, key)

    fwd = jax.jit(lambda p, xx: encoder_forward(p, xx, config))
    y = jax.block_until_ready(fwd(params, x))
    assert y.shape == (2, config['convbn_channels'][-1], 4, 4), y.shape

    # Tight check vs a reference that also uses bf16 matmul operands (f32 acc).
    y_ref_bf16 = encoder_reference(params, x, config, matmul_dtype=jnp.bfloat16)
    np.testing.assert_allclose(np.asarray(y), np.asarray(y_ref_bf16),
                               atol=2e-3, rtol=2e-3)
    # Looser check vs the exact f32 PyTorch-semantics reference (bf16 operand
    # rounding is the only systematic difference).
    y_ref_f32 = encoder_reference(params, x, config, matmul_dtype=jnp.float32)
    np.testing.assert_allclose(np.asarray(y), np.asarray(y_ref_f32),
                               atol=5e-2, rtol=5e-2)
    print("KERNEL_OK")
</pallas_src>

<mosaic_0001>
module attributes {stable_mosaic.version = 11 : i64} {
  func.func @_conv_stats_kernel(%arg0: i32, %arg1: memref<8x48xbf16, #tpu.memory_space<vmem>>, %arg2: memref<48x128xbf16, #tpu.memory_space<vmem>>, %arg3: memref<8x128xf32, #tpu.memory_space<vmem>>, %arg4: memref<1x8x128xf32, #tpu.memory_space<vmem>>, %arg5: memref<1x8x128xf32, #tpu.memory_space<vmem>>) attributes {dimension_semantics = [#tpu.dimension_semantics<parallel>], iteration_bounds = array<i64: 1>, scalar_prefetch = 0 : i64, scratch_operands = 0 : i64, tpu.core_type = #tpu.core_type<tc>, window_params = [{pipeline_mode = #tpu.pipeline_mode<synchronous>, transform_indices = @transform_0, window_bounds = array<i64: 8, 48>}, {transform_indices = @transform_1, window_bounds = array<i64: 48, 128>}, {transform_indices = @transform_2, window_bounds = array<i64: 8, 128>}, {transform_indices = @transform_3, window_bounds = array<i64: 1, 8, 128>}, {transform_indices = @transform_4, window_bounds = array<i64: 1, 8, 128>}]} {
    %c0 = arith.constant 0 : index
    %c0_0 = arith.constant 0 : index
    %0 = vector.load %arg1[%c0, %c0_0] : memref<8x48xbf16, #tpu.memory_space<vmem>>, vector<8x48xbf16>
    %c0_1 = arith.constant 0 : index
    %c0_2 = arith.constant 0 : index
    %1 = vector.load %arg2[%c0_1, %c0_2] : memref<48x128xbf16, #tpu.memory_space<vmem>>, vector<48x128xbf16>
    %cst = arith.constant dense<0.000000e+00> : vector<8x128xf32>
    %2 = tpu.matmul %0, %1, %cst {dimension_numbers = #tpu.dot_dimension_numbers<[1], [0], [0], [1], [0, 0, 1, 1], [], []>} : vector<8x48xbf16>, vector<48x128xbf16>, vector<8x128xf32> -> vector<8x128xf32>
    %c0_3 = arith.constant 0 : index
    %c0_4 = arith.constant 0 : index
    %3 = vector.load %arg3[%c0_3, %c0_4] : memref<8x128xf32, #tpu.memory_space<vmem>>, vector<8x128xf32>
    tpu.vector_store %arg3[%c0_3, %c0_4], %2 {strides = array<i32>} : memref<8x128xf32, #tpu.memory_space<vmem>>, vector<8x128xf32>,
    %cst_5 = arith.constant 0.000000e+00 : f32
    %4 = vector.broadcast %cst_5 : f32 to vector<8x128xf32>
    %cst_6 = arith.constant 0.000000e+00 : f32
    %5 = vector.broadcast %cst_6 : f32 to vector<8x128xf32>
    %6 = arith.addf %4, %2 : vector<8x128xf32>
    %7 = arith.mulf %2, %2 : vector<8x128xf32>
    %8 = arith.addf %5, %7 : vector<8x128xf32>
    %9 = vector.shape_cast %6 : vector<8x128xf32> to vector<1x8x128xf32>
    %c0_7 = arith.constant 0 : index
    %c0_8 = arith.constant 0 : index
    %c0_9 = arith.constant 0 : index
    %10 = vector.load %arg4[%c0_7, %c0_8, %c0_9] : memref<1x8x128xf32, #tpu.memory_space<vmem>>, vector<1x8x128xf32>
    tpu.vector_store %arg4[%c0_7, %c0_8, %c0_9], %9 {strides = array<i32>} : memref<1x8x128xf32, #tpu.memory_space<vmem>>, vector<1x8x128xf32>,
    %11 = vector.shape_cast %8 : vector<8x128xf32> to vector<1x8x128xf32>
    %c0_10 = arith.constant 0 : index
    %c0_11 = arith.constant 0 : index
    %c0_12 = arith.constant 0 : index
    %12 = vector.load %arg5[%c0_10, %c0_11, %c0_12] : memref<1x8x128xf32, #tpu.memory_space<vmem>>, vector<1x8x128xf32>
    tpu.vector_store %arg5[%c0_10, %c0_11, %c0_12], %11 {strides = array<i32>} : memref<1x8x128xf32, #tpu.memory_space<vmem>>, vector<1x8x128xf32>,
    return
  }
  func.func @transform_0(%arg0: i32) -> (i32, i32) {
    %c0_i32 = arith.constant 0 : i32
    %c0_i32_0 = arith.constant 0 : i32
    %c0_i32_1 = arith.constant 0 : i32
    return %c0_i32, %c0_i32_0 : i32, i32
  }
  func.func @transform_1(%arg0: i32) -> (i32, i32) {
    %c0_i32 = arith.constant 0 : i32
    %c0_i32_0 = arith.constant 0 : i32
    return %c0_i32, %arg0 : i32, i32
  }
  func.func @transform_2(%arg0: i32) -> (i32, i32) {
    %c0_i32 = arith.constant 0 : i32
    %c0_i32_0 = arith.constant 0 : i32
    return %c0_i32, %arg0 : i32, i32
  }
  func.func @transform_3(%arg0: i32) -> (i32, i32, i32) {
    %c0_i32 = arith.constant 0 : i32
    %c0_i32_0 = arith.constant 0 : i32
    %c0_i32_1 = arith.constant 0 : i32
    return %arg0, %c0_i32, %c0_i32_0 : i32, i32, i32
  }
  func.func @transform_4(%arg0: i32) -> (i32, i32, i32) {
    %c0_i32 = arith.constant 0 : i32
    %c0_i32_0 = arith.constant 0 : i32
    %c0_i32_1 = arith.constant 0 : i32
    return %arg0, %c0_i32, %c0_i32_0 : i32, i32, i32
  }
}

module attributes {stable_mosaic.version = 11 : i64} {
  func.func @_conv_stats_kernel(%arg0: i32, %arg1: memref<8x80xbf16, #tpu.memory_space<vmem>>, %arg2: memref<80x128xbf16, #tpu.memory_space<vmem>>, %arg3: memref<8x128xf32, #tpu.memory_space<vmem>>, %arg4: memref<1x8x128xf32, #tpu.memory_space<vmem>>, %arg5: memref<1x8x128xf32, #tpu.memory_space<vmem>>) attributes {dimension_semantics = [#tpu.dimension_semantics<parallel>], iteration_bounds = array<i64: 1>, scalar_prefetch = 0 : i64, scratch_operands = 0 : i64, tpu.core_type = #tpu.core_type<tc>, window_params = [{pipeline_mode = #tpu.pipeline_mode<synchronous>, transform_indices = @transform_0, window_bounds = array<i64: 8, 80>}, {transform_indices = @transform_1, window_bounds = array<i64: 80, 128>}, {transform_indices = @transform_2, window_bounds = array<i64: 8, 128>}, {transform_indices = @transform_3, window_bounds = array<i64: 1, 8, 128>}, {transform_indices = @transform_4, window_bounds = array<i64: 1, 8, 128>}]} {
    %c0 = arith.constant 0 : index
    %c0_0 = arith.constant 0 : index
    %0 = vector.load %arg1[%c0, %c0_0] : memref<8x80xbf16, #tpu.memory_space<vmem>>, vector<8x80xbf16>
    %c0_1 = arith.constant 0 : index
    %c0_2 = arith.constant 0 : index
    %1 = vector.load %arg2[%c0_1, %c0_2] : memref<80x128xbf16, #tpu.memory_space<vmem>>, vector<80x128xbf16>
    %cst = arith.constant dense<0.000000e+00> : vector<8x128xf32>
    %2 = tpu.matmul %0, %1, %cst {dimension_numbers = #tpu.dot_dimension_numbers<[1], [0], [0], [1], [0, 0, 1, 1], [], []>} : vector<8x80xbf16>, vector<80x128xbf16>, vector<8x128xf32> -> vector<8x128xf32>
    %c0_3 = arith.constant 0 : index
    %c0_4 = arith.constant 0 : index
    %3 = vector.load %arg3[%c0_3, %c0_4] : memref<8x128xf32, #tpu.memory_space<vmem>>, vector<8x128xf32>
    tpu.vector_store %arg3[%c0_3, %c0_4], %2 {strides = array<i32>} : memref<8x128xf32, #tpu.memory_space<vmem>>, vector<8x128xf32>,
    %cst_5 = arith.constant 0.000000e+00 : f32
    %4 = vector.broadcast %cst_5 : f32 to vector<8x128xf32>
    %cst_6 = arith.constant 0.000000e+00 : f32
    %5 = vector.broadcast %cst_6 : f32 to vector<8x128xf32>
    %6 = arith.addf %4, %2 : vector<8x128xf32>
    %7 = arith.mulf %2, %2 : vector<8x128xf32>
    %8 = arith.addf %5, %7 : vector<8x128xf32>
    %9 = vector.shape_cast %6 : vector<8x128xf32> to vector<1x8x128xf32>
    %c0_7 = arith.constant 0 : index
    %c0_8 = arith.constant 0 : index
    %c0_9 = arith.constant 0 : index
    %10 = vector.load %arg4[%c0_7, %c0_8, %c0_9] : memref<1x8x128xf32, #tpu.memory_space<vmem>>, vector<1x8x128xf32>
    tpu.vector_store %arg4[%c0_7, %c0_8, %c0_9], %9 {strides = array<i32>} : memref<1x8x128xf32, #tpu.memory_space<vmem>>, vector<1x8x128xf32>,
    %11 = vector.shape_cast %8 : vector<8x128xf32> to vector<1x8x128xf32>
    %c0_10 = arith.constant 0 : index
    %c0_11 = arith.constant 0 : index
    %c0_12 = arith.constant 0 : index
    %12 = vector.load %arg5[%c0_10, %c0_11, %c0_12] : memref<1x8x128xf32, #tpu.memory_space<vmem>>, vector<1x8x128xf32>
    tpu.vector_store %arg5[%c0_10, %c0_11, %c0_12], %11 {strides = array<i32>} : memref<1x8x128xf32, #tpu.memory_space<vmem>>, vector<1x8x128xf32>,
    return
  }
  func.func @transform_0(%arg0: i32) -> (i32, i32) {
    %c0_i32 = arith.constant 0 : i32
    %c0_i32_0 = arith.constant 0 : i32
    %c0_i32_1 = arith.constant 0 : i32
    return %c0_i32, %c0_i32_0 : i32, i32
  }
  func.func @transform_1(%arg0: i32) -> (i32, i32) {
    %c0_i32 = arith.constant 0 : i32
    %c0_i32_0 = arith.constant 0 : i32
    return %c0_i32, %arg0 : i32, i32
  }
  func.func @transform_2(%arg0: i32) -> (i32, i32) {
    %c0_i32 = arith.constant 0 : i32
    %c0_i32_0 = arith.constant 0 : i32
    return %c0_i32, %arg0 : i32, i32
  }
  func.func @transform_3(%arg0: i32) -> (i32, i32, i32) {
    %c0_i32 = arith.constant 0 : i32
    %c0_i32_0 = arith.constant 0 : i32
    %c0_i32_1 = arith.constant 0 : i32
    return %arg0, %c0_i32, %c0_i32_0 : i32, i32, i32
  }
  func.func @transform_4(%arg0: i32) -> (i32, i32, i32) {
    %c0_i32 = arith.constant 0 : i32
    %c0_i32_0 = arith.constant 0 : i32
    %c0_i32_1 = arith.constant 0 : i32
    return %arg0, %c0_i32, %c0_i32_0 : i32, i32, i32
  }
}

module attributes {stable_mosaic.version = 11 : i64} {
  func.func @_conv_kernel(%arg0: i32, %arg1: memref<8x80xbf16, #tpu.memory_space<vmem>>, %arg2: memref<80x128xbf16, #tpu.memory_space<vmem>>, %arg3: memref<8x128xf32, #tpu.memory_space<vmem>>) attributes {dimension_semantics = [#tpu.dimension_semantics<parallel>], iteration_bounds = array<i64: 1>, scalar_prefetch = 0 : i64, scratch_operands = 0 : i64, tpu.core_type = #tpu.core_type<tc>, window_params = [{pipeline_mode = #tpu.pipeline_mode<synchronous>, transform_indices = @transform_0, window_bounds = array<i64: 8, 80>}, {transform_indices = @transform_1, window_bounds = array<i64: 80, 128>}, {transform_indices = @transform_2, window_bounds = array<i64: 8, 128>}]} {
    %c0 = arith.constant 0 : index
    %c0_0 = arith.constant 0 : index
    %0 = vector.load %arg1[%c0, %c0_0] : memref<8x80xbf16, #tpu.memory_space<vmem>>, vector<8x80xbf16>
    %c0_1 = arith.constant 0 : index
    %c0_2 = arith.constant 0 : index
    %1 = vector.load %arg2[%c0_1, %c0_2] : memref<80x128xbf16, #tpu.memory_space<vmem>>, vector<80x128xbf16>
    %cst = arith.constant dense<0.000000e+00> : vector<8x128xf32>
    %2 = tpu.matmul %0, %1, %cst {dimension_numbers = #tpu.dot_dimension_numbers<[1], [0], [0], [1], [0, 0, 1, 1], [], []>} : vector<8x80xbf16>, vector<80x128xbf16>, vector<8x128xf32> -> vector<8x128xf32>
    %c0_3 = arith.constant 0 : index
    %c0_4 = arith.constant 0 : index
    %3 = vector.load %arg3[%c0_3, %c0_4] : memref<8x128xf32, #tpu.memory_space<vmem>>, vector<8x128xf32>
    tpu.vector_store %arg3[%c0_3, %c0_4], %2 {strides = array<i32>} : memref<8x128xf32, #tpu.memory_space<vmem>>, vector<8x128xf32>,
    return
  }
  func.func @transform_0(%arg0: i32) -> (i32, i32) {
    %c0_i32 = arith.constant 0 : i32
    %c0_i32_0 = arith.constant 0 : i32
    %c0_i32_1 = arith.constant 0 : i32
    return %c0_i32, %c0_i32_0 : i32, i32
  }
  func.func @transform_1(%arg0: i32) -> (i32, i32) {
    %c0_i32 = arith.constant 0 : i32
    %c0_i32_0 = arith.constant 0 : i32
    return %c0_i32, %arg0 : i32, i32
  }
  func.func @transform_2(%arg0: i32) -> (i32, i32) {
    %c0_i32 = arith.constant 0 : i32
    %c0_i32_0 = arith.constant 0 : i32
    return %c0_i32, %arg0 : i32, i32
  }
}

</mosaic_0001>

<bundles_post_ra>
// kernel: _lambda_.3
= control target key start
LH: loop header
LB: loop body
LE: loop exit
PB: predicated region body
PF: predicated region fallthrough
CT: control target
= control target key end

     0   :  { %v125_v0 = vmov 0.0   ;;  %vm126_vm0 = vmmov 0   ;;  %vm40_vm1 = vcmask 392192   ;;  %s173_s1 = inlined_call_operand.vmem [shape: bf16[48,128], index: 1, kind: input, shape index: {}]   ;;  %s174_s0 = inlined_call_operand.vmem [shape: bf16[8,48], index: 0, kind: input, shape index: {}]   ;;  %s175_s2 = inlined_call_operand.vmem [shape: f32[8,128], index: 2, kind: output, shape index: {0}]   ;;  %s176_s3 = inlined_call_operand.vmem [shape: f32[1,8,128], index: 3, kind: output, shape index: {1}]   ;;  %s177_s4 = inlined_call_operand.vmem [shape: f32[1,8,128], index: 4, kind: output, shape index: {2}]  }
   0x1   :  { %110 = vmatprep.subr.bf16.mxu0 %v125_v0  ;;  %v122_v1 = vld [vmem:[%s173_s1 + $0x10] sm:$0xff]   ;;  %116 = vmatprep.mubr.msk.bf16.mxu0 %vm126_vm0, %v125_v0  ;;  %v123_v2 = vld [vmem:[%s173_s1 + $0x8] sm:$0xff]   ;;  %v124_v3 = vld [vmem:[%s173_s1] sm:$0xff]  }
   0x2   :  { %111 = vmatpush3.bf16.msra.mxu0 %v122_v1  ;;  %v15_v4 = vld [vmem:[%s174_s0] sm:$0xf] }
   0x3   :  { %112 = vmatprep.subr.bf16.mxu0 %v125_v0 }
   0x6   :  { %113 = vmatpush3.bf16.msra.mxu0 %v123_v2 }
   0x7   :  { %114 = vmatprep.subr.bf16.mxu0 %v125_v0 }
   0xa   :  { %115 = vmatpush3.bf16.msra.mxu0 %v124_v3 }
   0xd   :  { %117 = vmatmul.mubr.msk.bf16.vlgmr.msra.gmra.mxu0 %vm40_vm1, %v15_v4 }
  0xcd   :  { %v78_v5 = vpop.f32.mrf.mxu0 }
  0xce   :  { %84 = vst [vmem:[%s175_s2] sm:$0xff] %v78_v5  ;;  %v86_v6 = vmul.f32 %v78_v5, %v78_v5  ;;  %88 = vst [vmem:[%s176_s3] sm:$0xff] %v78_v5 }
  0xcf   :  { %v118_v7 = vpop.f32.mrf.mxu0 }
  0xd0   :  { %89 = vst [vmem:[%s177_s4] sm:$0xff] %v86_v6 }
  0xd1   :  { %v81_v8 = vpop.f32.mrf.mxu0 }
  0xd3   :  { %v119_v9 = vpop.f32.mrf.mxu0 }

// kernel: _lambda_.4
= control target key start
LH: loop header
LB: loop body
LE: loop exit
PB: predicated region body
PF: predicated region fallthrough
CT: control target
= control target key end

     0   :  { %v151_v0 = vmov 0.0   ;;  %vm152_vm0 = vmmov 0   ;;  %vm56_vm1 = vcmask 654336   ;;  %s205_s1 = inlined_call_operand.vmem [shape: bf16[80,128], index: 1, kind: input, shape index: {}]   ;;  %s206_s0 = inlined_call_operand.vmem [shape: bf16[8,80], index: 0, kind: input, shape index: {}]   ;;  %s207_s2 = inlined_call_operand.vmem [shape: f32[8,128], index: 2, kind: output, shape index: {0}]   ;;  %s208_s3 = inlined_call_operand.vmem [shape: f32[1,8,128], index: 3, kind: output, shape index: {1}]   ;;  %s209_s4 = inlined_call_operand.vmem [shape: f32[1,8,128], index: 4, kind: output, shape index: {2}]  }
   0x1   :  { %130 = vmatprep.subr.bf16.mxu0 %v151_v0  ;;  %v146_v1 = vld [vmem:[%s205_s1 + $0x20] sm:$0xff]   ;;  %140 = vmatprep.mubr.msk.bf16.mxu0 %vm152_vm0, %v151_v0  ;;  %v147_v2 = vld [vmem:[%s205_s1 + $0x18] sm:$0xff]   ;;  %v148_v3 = vld [vmem:[%s205_s1 + $0x10] sm:$0xff]  }
   0x2   :  { %131 = vmatpush3.bf16.msra.mxu0 %v146_v1  ;;  %v149_v4 = vld [vmem:[%s205_s1 + $0x8] sm:$0xff]   ;;  %v150_v5 = vld [vmem:[%s205_s1] sm:$0xff]  }
   0x3   :  { %132 = vmatprep.subr.bf16.mxu0 %v151_v0  ;;  %v15_v6 = vld [vmem:[%s206_s0] sm:$0xf] }
   0x6   :  { %133 = vmatpush3.bf16.msra.mxu0 %v147_v2 }
   0x7   :  { %134 = vmatprep.subr.bf16.mxu0 %v151_v0 }
   0xa   :  { %135 = vmatpush3.bf16.msra.mxu0 %v148_v3 }
   0xb   :  { %136 = vmatprep.subr.bf16.mxu0 %v151_v0 }
   0xe   :  { %137 = vmatpush3.bf16.msra.mxu0 %v149_v4 }
   0xf   :  { %138 = vmatprep.subr.bf16.mxu0 %v151_v0 }
  0x12   :  { %139 = vmatpush3.bf16.msra.mxu0 %v150_v5 }
  0x15   :  { %141 = vmatmul.mubr.msk.bf16.vlgmr.msra.gmra.mxu0 %vm56_vm1, %v15_v6 }
  0xd5   :  { %v94_v7 = vpop.f32.mrf.mxu0 }
  0xd6   :  { %100 = vst [vmem:[%s207_s2] sm:$0xff] %v94_v7  ;;  %v102_v8 = vmul.f32 %v94_v7, %v94_v7  ;;  %104 = vst [vmem:[%s208_s3] sm:$0xff] %v94_v7 }
  0xd7   :  { %v142_v9 = vpop.f32.mrf.mxu0 }
  0xd8   :  { %105 = vst [vmem:[%s209_s4] sm:$0xff] %v102_v8 }
  0xd9   :  { %v97_v10 = vpop.f32.mrf.mxu0 }
  0xdb   :  { %v143_v11 = vpop.f32.mrf.mxu0 }

// kernel: _lambda_.5
= control target key start
LH: loop header
LB: loop body
LE: loop exit
PB: predicated region body
PF: predicated region fallthrough
CT: control target
= control target key end

     0   :  { %v135_v0 = vmov 0.0   ;;  %vm136_vm0 = vmmov 0   ;;  %vm53_vm1 = vcmask 654336   ;;  %s173_s1 = inlined_call_operand.vmem [shape: bf16[80,128], index: 1, kind: input, shape index: {}]   ;;  %s174_s0 = inlined_call_operand.vmem [shape: bf16[8,80], index: 0, kind: input, shape index: {}]   ;;  %s175_s2 = inlined_call_operand.vmem [shape: f32[8,128], index: 2, kind: output, shape index: {}]  }
   0x1   :  { %114 = vmatprep.subr.bf16.mxu0 %v135_v0  ;;  %v130_v1 = vld [vmem:[%s173_s1 + $0x20] sm:$0xff]   ;;  %124 = vmatprep.mubr.msk.bf16.mxu0 %vm136_vm0, %v135_v0  ;;  %v131_v2 = vld [vmem:[%s173_s1 + $0x18] sm:$0xff]   ;;  %v132_v3 = vld [vmem:[%s173_s1 + $0x10] sm:$0xff]  }
   0x2   :  { %115 = vmatpush3.bf16.msra.mxu0 %v130_v1  ;;  %v133_v4 = vld [vmem:[%s173_s1 + $0x8] sm:$0xff]   ;;  %v134_v5 = vld [vmem:[%s173_s1] sm:$0xff]  }
   0x3   :  { %116 = vmatprep.subr.bf16.mxu0 %v135_v0  ;;  %v12_v6 = vld [vmem:[%s174_s0] sm:$0xf] }
   0x6   :  { %117 = vmatpush3.bf16.msra.mxu0 %v131_v2 }
   0x7   :  { %118 = vmatprep.subr.bf16.mxu0 %v135_v0 }
   0xa   :  { %119 = vmatpush3.bf16.msra.mxu0 %v132_v3 }
   0xb   :  { %120 = vmatprep.subr.bf16.mxu0 %v135_v0 }
   0xe   :  { %121 = vmatpush3.bf16.msra.mxu0 %v133_v4 }
   0xf   :  { %122 = vmatprep.subr.bf16.mxu0 %v135_v0 }
  0x12   :  { %123 = vmatpush3.bf16.msra.mxu0 %v134_v5 }
  0x15   :  { %125 = vmatmul.mubr.msk.bf16.vlgmr.msra.gmra.mxu0 %vm53_vm1, %v12_v6 }
  0xd5   :  { %v91_v7 = vpop.f32.mrf.mxu0 }
  0xd6   :  { %97 = vst [vmem:[%s175_s2] sm:$0xff] %v91_v7 }
  0xd7   :  { %v126_v8 = vpop.f32.mrf.mxu0 }
  0xd9   :  { %v94_v9 = vpop.f32.mrf.mxu0 }
  0xdb   :  { %v127_v10 = vpop.f32.mrf.mxu0 }

</bundles_post_ra>
